<compile_context>
chip_gen: v7x
topology: tpu7x:2x2x1
jax: 0.10.0
libtpu: 0.0.40
codegen_flags: <defaults>
</compile_context>

<pallas_src>
import functools

import jax
import jax.numpy as jnp
from jax.experimental import pallas as pl
from jax.experimental.pallas import tpu as pltpu

INPUT_SIZE = 9
HIDDEN_SIZE = 64
OUTPUT_SIZE = 32
PACK = 128 // OUTPUT_SIZE           # 4 batch rows packed per 128-wide lane-row
PACKED_IN = PACK * INPUT_SIZE       # 36
PACKED_OUT = PACK * OUTPUT_SIZE     # 128

MAX_TILE_ROWS = 8192                # packed rows per grid step (= 32768 batch rows)
MIN_SPLIT_ROWS = 4096               # force >=2 grid steps above this (v7x megacore)


def _round_up(x, m):
    return ((x + m - 1) // m) * m


def _pick_tile(n_rows):
    """Packed-row tile: as large as VMEM comfortably allows, but with >=2 grid
    steps for large-ish batches so both v7x TensorCores engage."""
    if n_rows > MAX_TILE_ROWS:
        return MAX_TILE_ROWS
    if n_rows > MIN_SPLIT_ROWS:
        return min(MAX_TILE_ROWS, _round_up(pl.cdiv(n_rows, 2), 8))
    return n_rows                    # single step; block == full array dims (legal)


def mlp_kernel(x_ref, w1_ref, b1_ref, w2_ref, b2_ref, o_ref):
    # fc1 (block-diagonal): (tile, 36) @ (36, 256), f32 accumulation.
    h = jnp.dot(x_ref[...], w1_ref[...], preferred_element_type=jnp.float32)
    h = jnp.maximum(h + b1_ref[...], 0.0)                       # bias + ReLU (f32)
    # fc2 (block-diagonal): (tile, 256) @ (256, 128); cast h back to the operand
    # dtype so a bf16 path keeps bf16 MXU passes, f32 path is a no-op cast.
    out = jnp.dot(h.astype(w2_ref.dtype), w2_ref[...],
                  preferred_element_type=jnp.float32)
    o_ref[...] = (out + b2_ref[...]).astype(o_ref.dtype)


@functools.partial(jax.jit, static_argnames=("compute_dtype", "out_dtype"))
def mlp_pallas(x, w1, b1, w2, b2, *, compute_dtype=None, out_dtype=None):
    """x: (B, 9); w1: (9, 64); b1: (1, 64); w2: (64, 32); b2: (1, 32).

    compute_dtype: dtype of the x / weight MXU operands (e.g. jnp.bfloat16 to
        halve input DMA + matmul passes); accumulation is always f32.
    out_dtype: output dtype; defaults to x.dtype (module semantics).
    """
    B = x.shape[0]
    cdt = x.dtype if compute_dtype is None else jnp.dtype(compute_dtype)
    odt = x.dtype if out_dtype is None else jnp.dtype(out_dtype)

    n_full = B // PACK                      # fully packed lane-rows
    tail = B - n_full * PACK                # <= 3 leftover batch rows

    outs = []
    if n_full > 0:
        x_main = x if tail == 0 else x[: n_full * PACK]
        x_packed = x_main.reshape(n_full, PACKED_IN).astype(cdt)     # (B/4, 36)

        # Block-diagonal weights / tiled biases (tiny; VMEM-resident).
        eye = jnp.eye(PACK, dtype=w1.dtype)
        w1_blk = jnp.kron(eye, w1).astype(cdt)                        # (36, 256)
        w2_blk = jnp.kron(eye, w2).astype(cdt)                        # (256, 128)
        b1_blk = jnp.tile(b1.astype(jnp.float32), (1, PACK))          # (1, 256)
        b2_blk = jnp.tile(b2.astype(jnp.float32), (1, PACK))          # (1, 128)

        tile_rows = _pick_tile(n_full)
        grid = (pl.cdiv(n_full, tile_rows),)

        # Constants: never re-fetched -> single buffer (reclaims ~170 KiB VMEM).
        def const(arr):
            return pl.BlockSpec(arr.shape, lambda i: (0, 0),
                                pipeline_mode=pl.Buffered(1))

        in_bytes = x_packed.size * x_packed.dtype.itemsize
        out_bytes = n_full * PACKED_OUT * jnp.dtype(odt).itemsize
        w_bytes = (w1_blk.size + w2_blk.size) * w1_blk.dtype.itemsize
        b_bytes = 4 * (b1_blk.size + b2_blk.size)

        out_packed = pl.pallas_call(
            mlp_kernel,
            out_shape=jax.ShapeDtypeStruct((n_full, PACKED_OUT), odt),
            grid=grid,
            in_specs=[
                pl.BlockSpec((tile_rows, PACKED_IN), lambda i: (i, 0)),
                const(w1_blk),
                const(b1_blk),
                const(w2_blk),
                const(b2_blk),
            ],
            out_specs=pl.BlockSpec((tile_rows, PACKED_OUT), lambda i: (i, 0)),
            compiler_params=pltpu.CompilerParams(
                dimension_semantics=("parallel",),   # batch grid -> both TCs (v7x)
            ),
            cost_estimate=pl.CostEstimate(
                flops=2 * n_full * PACK * (INPUT_SIZE * HIDDEN_SIZE
                                           + HIDDEN_SIZE * OUTPUT_SIZE),
                transcendentals=0,
                bytes_accessed=in_bytes + out_bytes + w_bytes + b_bytes,
            ),
        )(x_packed, w1_blk, b1_blk, w2_blk, b2_blk)

        # (n_full, 128) -> (n_full*4, 32): contiguous reshape, no copy.
        outs.append(out_packed.reshape(n_full * PACK, OUTPUT_SIZE))

    if tail > 0:
        # <= 3 leftover rows: tiny plain-XLA matmul instead of padding the whole
        # batch and re-slicing the (output-dominated) result.
        x_tail = x[n_full * PACK:]
        h_t = jnp.maximum(x_tail @ w1 + b1, 0.0)
        outs.append((h_t @ w2 + b2).astype(odt))

    return outs[0] if len(outs) == 1 else jnp.concatenate(outs, axis=0)


def init_params(key):
    # Deterministic init mimicking nn.Linear's U(-1/sqrt(fan_in), 1/sqrt(fan_in)).
    # Weights stored as [in_features, out_features] (transpose of PyTorch layout).
    k1, k2, k3, k4 = jax.random.split(key, 4)
    lim1 = 1.0 / jnp.sqrt(jnp.float32(INPUT_SIZE))
    lim2 = 1.0 / jnp.sqrt(jnp.float32(HIDDEN_SIZE))
    w1 = jax.random.uniform(k1, (INPUT_SIZE, HIDDEN_SIZE), jnp.float32, -lim1, lim1)
    b1 = jax.random.uniform(k2, (1, HIDDEN_SIZE), jnp.float32, -lim1, lim1)
    w2 = jax.random.uniform(k3, (HIDDEN_SIZE, OUTPUT_SIZE), jnp.float32, -lim2, lim2)
    b2 = jax.random.uniform(k4, (1, OUTPUT_SIZE), jnp.float32, -lim2, lim2)
    return w1, b1, w2, b2


def mlp_ref(x, w1, b1, w2, b2):
    h = jnp.maximum(x @ w1 + b1, 0.0)
    return h @ w2 + b2


if __name__ == "__main__":
    key = jax.random.PRNGKey(0)
    kx, kp = jax.random.split(key)
    w1, b1, w2, b2 = init_params(kp)

    # 1) Small deterministic test, B multiple of PACK (pure kernel path, f32).
    B = 8
    x = jax.random.normal(kx, (B, INPUT_SIZE), jnp.float32)
    out = jax.block_until_ready(mlp_pallas(x, w1, b1, w2, b2))
    ref = mlp_ref(x, w1, b1, w2, b2)
    assert out.shape == (B, OUTPUT_SIZE)
    assert jnp.allclose(out, ref, atol=1e-5, rtol=1e-5)

    # 2) Tail path (B not a multiple of PACK): kernel on 4 rows + XLA on 2 rows.
    B2 = 6
    x2 = jax.random.normal(jax.random.PRNGKey(1), (B2, INPUT_SIZE), jnp.float32)
    out2 = jax.block_until_ready(mlp_pallas(x2, w1, b1, w2, b2))
    ref2 = mlp_ref(x2, w1, b1, w2, b2)
    assert out2.shape == (B2, OUTPUT_SIZE)
    assert jnp.allclose(out2, ref2, atol=1e-5, rtol=1e-5)

    # 3) Tiny batch (< PACK): no packed rows, pure-XLA fallback.
    B3 = 3
    x3 = jax.random.normal(jax.random.PRNGKey(2), (B3, INPUT_SIZE), jnp.float32)
    out3 = jax.block_until_ready(mlp_pallas(x3, w1, b1, w2, b2))
    assert out3.shape == (B3, OUTPUT_SIZE)
    assert jnp.allclose(out3, mlp_ref(x3, w1, b1, w2, b2), atol=1e-5, rtol=1e-5)

    # 4) bf16-operand path (f32 accumulation, f32 output) -- looser tolerance.
    out_bf16 = jax.block_until_ready(
        mlp_pallas(x, w1, b1, w2, b2, compute_dtype=jnp.bfloat16))
    assert out_bf16.shape == (B, OUTPUT_SIZE)
    assert jnp.allclose(out_bf16, ref, atol=3e-2, rtol=3e-2)

    print("KERNEL_OK")
</pallas_src>

<mosaic_0001>
module attributes {stable_mosaic.version = 11 : i64} {
  func.func @mlp_kernel(%arg0: i32, %arg1: memref<2x36xf32, #tpu.memory_space<vmem>>, %arg2: memref<36x256xf32, #tpu.memory_space<vmem>>, %arg3: memref<1x256xf32, #tpu.memory_space<vmem>>, %arg4: memref<256x128xf32, #tpu.memory_space<vmem>>, %arg5: memref<1x128xf32, #tpu.memory_space<vmem>>, %arg6: memref<2x128xf32, #tpu.memory_space<vmem>>) attributes {dimension_semantics = [#tpu.dimension_semantics<parallel>], iteration_bounds = array<i64: 1>, scalar_prefetch = 0 : i64, scratch_operands = 0 : i64, tpu.core_type = #tpu.core_type<tc>, window_params = [{transform_indices = @transform_0, window_bounds = array<i64: 2, 36>}, {pipeline_mode = #tpu.pipeline_mode<synchronous>, transform_indices = @transform_1, window_bounds = array<i64: 36, 256>}, {pipeline_mode = #tpu.pipeline_mode<synchronous>, transform_indices = @transform_2, window_bounds = array<i64: 1, 256>}, {pipeline_mode = #tpu.pipeline_mode<synchronous>, transform_indices = @transform_3, window_bounds = array<i64: 256, 128>}, {pipeline_mode = #tpu.pipeline_mode<synchronous>, transform_indices = @transform_4, window_bounds = array<i64: 1, 128>}, {transform_indices = @transform_5, window_bounds = array<i64: 2, 128>}]} {
    %c0 = arith.constant 0 : index
    %c0_0 = arith.constant 0 : index
    %0 = vector.load %arg1[%c0, %c0_0] : memref<2x36xf32, #tpu.memory_space<vmem>>, vector<2x36xf32>
    %c0_1 = arith.constant 0 : index
    %c0_2 = arith.constant 0 : index
    %1 = vector.load %arg2[%c0_1, %c0_2] : memref<36x256xf32, #tpu.memory_space<vmem>>, vector<36x256xf32>
    %cst = arith.constant dense<0.000000e+00> : vector<2x256xf32>
    %2 = tpu.matmul %0, %1, %cst {dimension_numbers = #tpu.dot_dimension_numbers<[1], [0], [0], [1], [0, 0, 1, 1], [], []>} : vector<2x36xf32>, vector<36x256xf32>, vector<2x256xf32> -> vector<2x256xf32>
    %c0_3 = arith.constant 0 : index
    %c0_4 = arith.constant 0 : index
    %3 = vector.load %arg3[%c0_3, %c0_4] : memref<1x256xf32, #tpu.memory_space<vmem>>, vector<1x256xf32>
    %4 = vector.broadcast %3 : vector<1x256xf32> to vector<2x256xf32>
    %5 = arith.addf %2, %4 : vector<2x256xf32>
    %cst_5 = arith.constant 0.000000e+00 : f32
    %6 = vector.broadcast %cst_5 : f32 to vector<2x256xf32>
    %7 = arith.maximumf %5, %6 : vector<2x256xf32>
    %c0_6 = arith.constant 0 : index
    %c0_7 = arith.constant 0 : index
    %8 = vector.load %arg4[%c0_6, %c0_7] : memref<256x128xf32, #tpu.memory_space<vmem>>, vector<256x128xf32>
    %cst_8 = arith.constant dense<0.000000e+00> : vector<2x128xf32>
    %9 = tpu.matmul %7, %8, %cst_8 {dimension_numbers = #tpu.dot_dimension_numbers<[1], [0], [0], [1], [0, 0, 1, 1], [], []>} : vector<2x256xf32>, vector<256x128xf32>, vector<2x128xf32> -> vector<2x128xf32>
    %c0_9 = arith.constant 0 : index
    %c0_10 = arith.constant 0 : index
    %10 = vector.load %arg5[%c0_9, %c0_10] : memref<1x128xf32, #tpu.memory_space<vmem>>, vector<1x128xf32>
    %11 = vector.broadcast %10 : vector<1x128xf32> to vector<2x128xf32>
    %12 = arith.addf %9, %11 : vector<2x128xf32>
    %c0_11 = arith.constant 0 : index
    %c0_12 = arith.constant 0 : index
    %13 = vector.load %arg6[%c0_11, %c0_12] : memref<2x128xf32, #tpu.memory_space<vmem>>, vector<2x128xf32>
    tpu.vector_store %arg6[%c0_11, %c0_12], %12 {strides = array<i32>} : memref<2x128xf32, #tpu.memory_space<vmem>>, vector<2x128xf32>,
    return
  }
  func.func @transform_0(%arg0: i32) -> (i32, i32) {
    %c0_i32 = arith.constant 0 : i32
    %c0_i32_0 = arith.constant 0 : i32
    return %arg0, %c0_i32 : i32, i32
  }
  func.func @transform_1(%arg0: i32) -> (i32, i32) {
    %c0_i32 = arith.constant 0 : i32
    %c0_i32_0 = arith.constant 0 : i32
    %c0_i32_1 = arith.constant 0 : i32
    return %c0_i32, %c0_i32_0 : i32, i32
  }
  func.func @transform_2(%arg0: i32) -> (i32, i32) {
    %c0_i32 = arith.constant 0 : i32
    %c0_i32_0 = arith.constant 0 : i32
    %c0_i32_1 = arith.constant 0 : i32
    return %c0_i32, %c0_i32_0 : i32, i32
  }
  func.func @transform_3(%arg0: i32) -> (i32, i32) {
    %c0_i32 = arith.constant 0 : i32
    %c0_i32_0 = arith.constant 0 : i32
    %c0_i32_1 = arith.constant 0 : i32
    return %c0_i32, %c0_i32_0 : i32, i32
  }
  func.func @transform_4(%arg0: i32) -> (i32, i32) {
    %c0_i32 = arith.constant 0 : i32
    %c0_i32_0 = arith.constant 0 : i32
    %c0_i32_1 = arith.constant 0 : i32
    return %c0_i32, %c0_i32_0 : i32, i32
  }
  func.func @transform_5(%arg0: i32) -> (i32, i32) {
    %c0_i32 = arith.constant 0 : i32
    %c0_i32_0 = arith.constant 0 : i32
    return %arg0, %c0_i32 : i32, i32
  }
}

</mosaic_0001>

<bundles_post_ra>
// kernel: mlp_pallas.1
= control target key start
LH: loop header
LB: loop body
LE: loop exit
PB: predicated region body
PF: predicated region fallthrough
CT: control target
= control target key end

     0   :  { %v321_v3 = vmov 0.0   ;;  %vm47_vm0 = vcmask 1043456   ;;  %vm43_vm1 = vcmask 293888   ;;  %s492_s1 = inlined_call_operand.vmem [shape: f32[36,256], index: 1, kind: input, shape index: {}]   ;;  %s493_s3 = inlined_call_operand.vmem [shape: f32[256,128], index: 3, kind: input, shape index: {}]   ;;  %s494_s0 = inlined_call_operand.vmem [shape: f32[2,36], index: 0, kind: input, shape index: {}]   ;;  %s495_s2 = inlined_call_operand.vmem [shape: f32[1,256], index: 2, kind: input, shape index: {}]   ;;  %s496_s4 = inlined_call_operand.vmem [shape: f32[1,128], index: 4, kind: input, shape index: {}]   ;;  %s497_s5 = inlined_call_operand.vmem [shape: f32[2,128], index: 5, kind: output, shape index: {}]  }
   0x1   :  { %v22_v0 = vld [vmem:[%s492_s1 + $0x8] sm:$0xff]  ;;  %v24_v1 = vld [vmem:[%s492_s1 + $0x18] sm:$0xff]  ;;  %v21_v2 = vld [vmem:[%s492_s1] sm:$0xff]  ;;  %118 = vmatprep.mubr.f32.mxu0 %v321_v3 }
   0x2   :  { %v280_v4 = vpack.c.bf16 %v24_v1, %v22_v0  ;;  %v23_v5 = vld [vmem:[%s492_s1 + $0x10] sm:$0xff]  ;;  %v26_v6 = vld [vmem:[%s492_s1 + $0x28] sm:$0xff]  ;;  %v28_v7 = vld [vmem:[%s492_s1 + $0x38] sm:$0xff]  ;;  %v33_v0 = vlaneseq }
   0x3   :  { %v282_v8 = vpack.c.bf16 %v23_v5, %v21_v2  ;;  %v284_v9 = vpack.c.bf16 %v28_v7, %v26_v6  ;;  %v25_v10 = vld [vmem:[%s492_s1 + $0x20] sm:$0xff]  ;;  %v27_v11 = vld [vmem:[%s492_s1 + $0x30] sm:$0xff]  ;;  %v30_v14 = vld [vmem:[%s492_s1 + $0x48] sm:$0xf] }
   0x4   :  { %281 = vmatprep.subr.bf16.mxu0 %v280_v4  ;;  %v143_v12 = vld [vmem:[%s493_s3 + $0x80] sm:$0xff]  ;;  %v286_v13 = vpack.c.bf16 %v27_v11, %v25_v10  ;;  %v144_v15 = vld [vmem:[%s493_s3 + $0x88] sm:$0xff]  ;;  %v145_v20 = vld [vmem:[%s493_s3 + $0x90] sm:$0xff]  ;;  %v34_v1 = vshrl.u32 %v33_v0, 7 }
   0x5   :  { %283 = vmatpush1.bf16.msra.mxu0 %v282_v8  ;;  %v127_v16 = vld [vmem:[%s493_s3] sm:$0xff]  ;;  %v128_v17 = vld [vmem:[%s493_s3 + $0x8] sm:$0xff]  ;;  %v288_v18 = vpack.c.bf16 %v144_v15, %v143_v12  ;;  %v146_v21 = vld [vmem:[%s493_s3 + $0x98] sm:$0xff] }
   0x6   :  { %285 = vmatprep.subr.bf16.mxu0 %v284_v9  ;;  %v290_v19 = vpack.c.bf16 %v128_v17, %v127_v16  ;;  %v129_v22 = vld [vmem:[%s493_s3 + $0x10] sm:$0xff]  ;;  %v292_v23 = vpack.c.bf16 %v146_v21, %v145_v20  ;;  %v130_v24 = vld [vmem:[%s493_s3 + $0x18] sm:$0xff]  ;;  %v147_v25 = vld [vmem:[%s493_s3 + $0xa0] sm:$0xff]  ;;  %v35_v2 = vsub.s32 0, %v34_v1  ;;  %v39_v4 = vsub.s32 1, %v34_v1 }
   0x7   :  { %v148_v26 = vld [vmem:[%s493_s3 + $0xa8] sm:$0xff]  ;;  %289 = vmatprep.subr.bf16.mxu1 %v288_v18  ;;  %v294_v27 = vpack.c.bf16 %v130_v24, %v129_v22  ;;  %v29_v28 = vld [vmem:[%s492_s1 + $0x40] sm:$0xf]  ;;  %v149_v33 = vld [vmem:[%s493_s3 + $0xb0] sm:$0xff] }
   0x8   :  { %291 = vmatpush3.bf16.msra.mxu1 %v290_v19  ;;  %v296_v29 = vpack.c.bf16 %v148_v26, %v147_v25  ;;  %v131_v30 = vld [vmem:[%s493_s3 + $0x20] sm:$0xff]  ;;  %v132_v31 = vld [vmem:[%s493_s3 + $0x28] sm:$0xff]  ;;  %v150_v34 = vld [vmem:[%s493_s3 + $0xb8] sm:$0xff] }
   0x9   :  { %287 = vmatpush1.bf16.msra.mxu0 %v286_v13  ;;  %293 = vmatprep.subr.bf16.mxu1 %v292_v23  ;;  %v20_v32 = vld [vmem:[%s494_s0] sm:$0x3]  ;;  %v298_v35 = vpack.c.bf16 %v132_v31, %v131_v30  ;;  %v300_v36 = vpack.c.bf16 %v150_v34, %v149_v33  ;;  %v133_v37 = vld [vmem:[%s493_s3 + $0x30] sm:$0xff]  ;;  %v134_v38 = vld [vmem:[%s493_s3 + $0x38] sm:$0xff] }
   0xa   :  { %241 = vmatprep.subr.msk.mxu0 %vm47_vm0, %v30_v14  ;;  %v151_v39 = vld [vmem:[%s493_s3 + $0xc0] sm:$0xff]  ;;  %v152_v40 = vld [vmem:[%s493_s3 + $0xc8] sm:$0xff]  ;;  %v302_v41 = vpack.c.bf16 %v134_v38, %v133_v37  ;;  %v153_v45 = vld [vmem:[%s493_s3 + $0xd0] sm:$0xff] }
   0xb   :  { %v304_v42 = vpack.c.bf16 %v152_v40, %v151_v39  ;;  %v135_v43 = vld [vmem:[%s493_s3 + $0x40] sm:$0xff]  ;;  %v136_v44 = vld [vmem:[%s493_s3 + $0x48] sm:$0xff]  ;;  %v154_v46 = vld [vmem:[%s493_s3 + $0xd8] sm:$0xff] }
   0xc   :  { %295 = vmatpush3.bf16.msra.mxu1 %v294_v27  ;;  %v306_v47 = vpack.c.bf16 %v136_v44, %v135_v43  ;;  %v308_v48 = vpack.c.bf16 %v154_v46, %v153_v45  ;;  %v137_v49 = vld [vmem:[%s493_s3 + $0x50] sm:$0xff]  ;;  %v138_v50 = vld [vmem:[%s493_s3 + $0x58] sm:$0xff]  ;;  %v155_v51 = vld [vmem:[%s493_s3 + $0xe0] sm:$0xff] }
   0xd   :  { %242 = vmatpush1.msk.msra.mxu0 %vm47_vm0, %v29_v28  ;;  %297 = vmatprep.subr.bf16.mxu1 %v296_v29  ;;  %v156_v52 = vld [vmem:[%s493_s3 + $0xe8] sm:$0xff]  ;;  %v310_v53 = vpack.c.bf16 %v138_v50, %v137_v49  ;;  %v139_v55 = vld [vmem:[%s493_s3 + $0x60] sm:$0xff]  ;;  %v157_v58 = vld [vmem:[%s493_s3 + $0xf0] sm:$0xff] }
   0xe   :  { %243 = vmatmul.mubr.msk.f32.vlgmr.msra.gmra.mrb[0].mxu0 %vm43_vm1, %v20_v32  ;;  %v312_v54 = vpack.c.bf16 %v156_v52, %v155_v51  ;;  %v140_v56 = vld [vmem:[%s493_s3 + $0x68] sm:$0xff]  ;;  %v158_v59 = vld [vmem:[%s493_s3 + $0xf8] sm:$0xff]  ;;  %v141_v61 = vld [vmem:[%s493_s3 + $0x70] sm:$0xff] }
   0xf   :  { %v314_v57 = vpack.c.bf16 %v140_v56, %v139_v55  ;;  %v316_v60 = vpack.c.bf16 %v158_v59, %v157_v58  ;;  %v142_v62 = vld [vmem:[%s493_s3 + $0x78] sm:$0xff]  ;;  %v31_v3 = vld [vmem:[%s495_s2] sm:$0x3] }
  0x10   :  { %299 = vmatpush3.bf16.msra.mxu1 %v298_v35  ;;  %v318_v63 = vpack.c.bf16 %v142_v62, %v141_v61  ;;  %v36_v5 = vrot.slane %v31_v3, %v35_v2  ;;  %v40_v6 = vrot.slane %v31_v3, %v39_v4  ;;  %v244_v14 = vld [vmem:[%s496_s4] ss:$0 sm:$0xff] }
  0x11   :  { %301 = vmatprep.subr.bf16.mxu1 %v300_v36 }
  0x14   :  { %303 = vmatpush3.bf16.msra.mxu1 %v302_v41 }
  0x15   :  { %305 = vmatprep.subr.bf16.mxu1 %v304_v42 }
  0x18   :  { %307 = vmatpush3.bf16.msra.mxu1 %v306_v47 }
  0x19   :  { %309 = vmatprep.subr.bf16.mxu1 %v308_v48 }
  0x1c   :  { %311 = vmatpush3.bf16.msra.mxu1 %v310_v53 }
  0x1d   :  { %313 = vmatprep.subr.bf16.mxu1 %v312_v54 }
  0x20   :  { %315 = vmatpush3.bf16.msra.mxu1 %v314_v57 }
  0x21   :  { %317 = vmatprep.subr.bf16.mxu1 %v316_v60 }
  0x24   :  { %319 = vmatpush3.bf16.msra.mxu1 %v318_v63 }
  0xe1   :  { %v120_v7 = vpop.f32.mrb[0].mxu0 }
  0xe2   :  { %v121_v8 = vadd.f32 %v120_v7, %v36_v5  ;;  %v122_v9 = vpop.f32.mrb[1].mxu0 }
  0xe3   :  { %v123_v10 = vadd.f32 %v122_v9, %v40_v6 }
  0xe4   :  { %v125_v12 = vmax.f32 %v121_v8, 0.0 }
  0xe5   :  { %v126_v11 = vmax.f32 %v123_v10, 0.0 }
  0xe7   :  { %230 = vmatprep.mubr.f32.mxu1 %v126_v11 }
  0xe8   :  { %231 = vmatmul.mubr.f32.vlgmr.msra.gmra.mrb[0].mxu1 %v125_v12 }
 0x1bb   :  { %v277_v13 = vpop.f32.mrb[0].mxu1 }
 0x1bc   :  { %v278_v15 = vpop.f32.mrb[1].mxu1 }
 0x1bd   :  { %v279_v16 = vadd.f32 %v278_v15, %v277_v13 }
 0x1bf   :  { %v233_v17 = vadd.f32 %v279_v16, %v244_v14 }
 0x1c1   :  { %236 = vst [vmem:[%s497_s5] sm:$0x3] %v233_v17 }

</bundles_post_ra>
